<compile_context>
chip_gen: v7x
topology: tpu7x:2x2x1
jax: 0.10.0
libtpu: 0.0.40
codegen_flags: <defaults>
</compile_context>

<pallas_src>
import functools

import jax
import jax.numpy as jnp
from jax.experimental import pallas as pl
from jax.experimental.pallas import tpu as pltpu

LANE = 128  # TPU lane width; pad the class dim up to this for unmasked stores.


def linear_kernel(x_ref, w_ref, b_ref, o_ref):
    # f32 MXU matmul with f32 accumulation (HBM-bound head: f32 operands are free
    # and keep full logits precision); bias add on the VPU; lane-dense store.
    o_ref[...] = (
        jnp.dot(x_ref[...], w_ref[...], preferred_element_type=jnp.float32)
        + b_ref[...]
    ).astype(o_ref.dtype)


def _round_up(n, m):
    return ((n + m - 1) // m) * m


def _select_tm(n, block_m):
    """Pick the M tile: big (mem-bound), multiple of 8, >=2 programs when possible."""
    if n < 8:
        return n                                  # full-dim block (allowed)
    tm = min(block_m, _round_up(n, 8))
    # v7x: guarantee >=2 grid programs so ("parallel",) splits the batch over both TCs.
    if n >= 16 and pl.cdiv(n, tm) < 2:
        tm = _round_up(pl.cdiv(n, 2), 8)
    return tm


@functools.partial(jax.jit, static_argnames=("block_m", "unpad"))
def resnet_clf_forward(x, w, b, *, block_m=1024, unpad=True):
    """Linear classifier head: returns (x @ w + b, x).

    x: (N, F) f32, w: (F, C) f32 (== PyTorch weight.T, identical math), b: (C,) f32.
    """
    N, F = x.shape
    C = w.shape[1]

    # --- lane-dense padding: class dim -> multiple of 128 (one-time, tiny) -----
    Cp = _round_up(max(C, LANE), LANE)
    w_p = jnp.zeros((F, Cp), w.dtype).at[:, :C].set(w)
    b_p = jnp.zeros((1, Cp), b.dtype).at[0, :C].set(b)

    # --- batch tiling: no x copy/pad; Pallas masks the partial last M-block ----
    # Safe only because F fits entirely in one K block (single-K invariant).
    tm = _select_tm(N, block_m)
    grid = (pl.cdiv(N, tm),)

    out_p = pl.pallas_call(
        linear_kernel,
        out_shape=jax.ShapeDtypeStruct((N, Cp), x.dtype),
        grid=grid,
        in_specs=[
            pl.BlockSpec((tm, F), lambda i: (i, 0)),   # x tile marches over batch
            pl.BlockSpec((F, Cp), lambda i: (0, 0)),   # W resident across the grid
            pl.BlockSpec((1, Cp), lambda i: (0, 0)),   # bias resident
        ],
        out_specs=pl.BlockSpec((tm, Cp), lambda i: (i, 0)),
        compiler_params=pltpu.CompilerParams(
            dimension_semantics=("parallel",)),        # v7x: batch split across both TCs
    )(x, w_p, b_p)

    if unpad:
        # Extra XLA copy — drop it (unpad=False) when the consumer can mask classes.
        return out_p[:, :C], x
    return out_p, x


if __name__ == "__main__":
    # Deterministic synthetic params (mimics nn.Linear's U(-1/sqrt(F), 1/sqrt(F))).
    expansion = 1
    in_features = 128 * expansion
    n_class = 10
    batch = 32

    key = jax.random.PRNGKey(0)
    kx, kw, kb = jax.random.split(key, 3)

    bound = 1.0 / (in_features ** 0.5)
    # Weight stored as (F, C); PyTorch keeps (C, F) and computes x @ W.T — identical math.
    w = jax.random.uniform(kw, (in_features, n_class), jnp.float32, -bound, bound)
    b = jax.random.uniform(kb, (n_class,), jnp.float32, -bound, bound)
    x = jax.random.normal(kx, (batch, in_features), jnp.float32)

    out, x_passthrough = resnet_clf_forward(x, w, b)
    jax.block_until_ready((out, x_passthrough))

    # f32 reference (kernel now uses f32 MXU operands -> tight tolerance).
    ref_f32 = x @ w + b

    assert out.shape == (batch, n_class)
    assert x_passthrough.shape == x.shape
    assert jnp.allclose(out, ref_f32, atol=1e-3, rtol=1e-3), float(
        jnp.max(jnp.abs(out - ref_f32)))
    assert jnp.array_equal(x_passthrough, x)

    print("KERNEL_OK")
</pallas_src>

<mosaic_0001>
module attributes {stable_mosaic.version = 11 : i64} {
  func.func @linear_kernel(%arg0: i32, %arg1: memref<16x128xf32, #tpu.memory_space<vmem>>, %arg2: memref<128x128xf32, #tpu.memory_space<vmem>>, %arg3: memref<1x128xf32, #tpu.memory_space<vmem>>, %arg4: memref<16x128xf32, #tpu.memory_space<vmem>>) attributes {dimension_semantics = [#tpu.dimension_semantics<parallel>], iteration_bounds = array<i64: 2>, scalar_prefetch = 0 : i64, scratch_operands = 0 : i64, tpu.core_type = #tpu.core_type<tc>, window_params = [{transform_indices = @transform_0, window_bounds = array<i64: 16, 128>}, {pipeline_mode = #tpu.pipeline_mode<synchronous>, transform_indices = @transform_1, window_bounds = array<i64: 128, 128>}, {pipeline_mode = #tpu.pipeline_mode<synchronous>, transform_indices = @transform_2, window_bounds = array<i64: 1, 128>}, {transform_indices = @transform_3, window_bounds = array<i64: 16, 128>}]} {
    %c0 = arith.constant 0 : index
    %c0_0 = arith.constant 0 : index
    %0 = vector.load %arg1[%c0, %c0_0] : memref<16x128xf32, #tpu.memory_space<vmem>>, vector<16x128xf32>
    %c0_1 = arith.constant 0 : index
    %c0_2 = arith.constant 0 : index
    %1 = vector.load %arg2[%c0_1, %c0_2] : memref<128x128xf32, #tpu.memory_space<vmem>>, vector<128x128xf32>
    %cst = arith.constant dense<0.000000e+00> : vector<16x128xf32>
    %2 = tpu.matmul %0, %1, %cst {dimension_numbers = #tpu.dot_dimension_numbers<[1], [0], [0], [1], [0, 0, 1, 1], [], []>} : vector<16x128xf32>, vector<128x128xf32>, vector<16x128xf32> -> vector<16x128xf32>
    %c0_3 = arith.constant 0 : index
    %c0_4 = arith.constant 0 : index
    %3 = vector.load %arg3[%c0_3, %c0_4] : memref<1x128xf32, #tpu.memory_space<vmem>>, vector<1x128xf32>
    %4 = vector.broadcast %3 : vector<1x128xf32> to vector<16x128xf32>
    %5 = arith.addf %2, %4 : vector<16x128xf32>
    %c0_5 = arith.constant 0 : index
    %c0_6 = arith.constant 0 : index
    %6 = vector.load %arg4[%c0_5, %c0_6] : memref<16x128xf32, #tpu.memory_space<vmem>>, vector<16x128xf32>
    tpu.vector_store %arg4[%c0_5, %c0_6], %5 {strides = array<i32>} : memref<16x128xf32, #tpu.memory_space<vmem>>, vector<16x128xf32>,
    return
  }
  func.func @transform_0(%arg0: i32) -> (i32, i32) {
    %c0_i32 = arith.constant 0 : i32
    %c0_i32_0 = arith.constant 0 : i32
    return %arg0, %c0_i32 : i32, i32
  }
  func.func @transform_1(%arg0: i32) -> (i32, i32) {
    %c0_i32 = arith.constant 0 : i32
    %c0_i32_0 = arith.constant 0 : i32
    %c0_i32_1 = arith.constant 0 : i32
    return %c0_i32, %c0_i32_0 : i32, i32
  }
  func.func @transform_2(%arg0: i32) -> (i32, i32) {
    %c0_i32 = arith.constant 0 : i32
    %c0_i32_0 = arith.constant 0 : i32
    %c0_i32_1 = arith.constant 0 : i32
    return %c0_i32, %c0_i32_0 : i32, i32
  }
  func.func @transform_3(%arg0: i32) -> (i32, i32) {
    %c0_i32 = arith.constant 0 : i32
    %c0_i32_0 = arith.constant 0 : i32
    return %arg0, %c0_i32 : i32, i32
  }
}

</mosaic_0001>

<bundles_post_ra>
// kernel: resnet_clf_forward.1
= control target key start
LH: loop header
LB: loop body
LE: loop exit
PB: predicated region body
PF: predicated region fallthrough
CT: control target
= control target key end

     0   :  { %s465_s12 = smov 0   ;;  %s540_s0 = inlined_call_operand.vmem [shape: f32[32,128], index: 0, kind: input, shape index: {}]   ;;  %s541_s1 = inlined_call_operand.vmem [shape: f32[128,128], index: 1, kind: input, shape index: {}]   ;;  %s542_s2 = inlined_call_operand.vmem [shape: f32[1,128], index: 2, kind: input, shape index: {}]   ;;  %s543_s3 = inlined_call_operand.vmem [shape: f32[32,128], index: 3, kind: output, shape index: {}]  }
   0x1 LB: > { %s332_s13 = sadd.s32 4294967295, %s443_s12   ;;  %p336_p0 = scmp.ge.s32.totalorder %s443_s12, 1  ;;  %s443_s12 = sphi %s465_s12, %s13_s12  }
   0x2   : > { %p138_p1 = scmp.lt.s32.totalorder %s443_s12, 3 }
   0x4   : > { %p139_p2 = pnand %p336_p0, %p138_p1 }
   0x5   : > { %v176_v0 = vld [vmem:[%s541_s1] sm:$0xff] (!%p139_p2)  ;;  %v177_v1 = vld [vmem:[%s541_s1 + $0x8] sm:$0xff] (!%p139_p2)  ;;  %v178_v2 = vld [vmem:[%s541_s1 + $0x10] sm:$0xff] (!%p139_p2)  ;;  %s337_s20 = sshll.u32 (!%p139_p2), %s332_s13, 1 }
   0x6   : > { %142 = sbr.rel (%p139_p2) target bundleno = 256 (0x100), region = 32  ;;  %v397_v3 = vpack.c.bf16 (!%p139_p2), %v177_v1, %v176_v0  ;;  %v179_v4 = vld [vmem:[%s541_s1 + $0x18] sm:$0xff] (!%p139_p2)  ;;  %p163_p3 = scmp.lt.s32.totalorder (!%p139_p2), %s337_s20, 3  ;;  %v180_v6 = vld [vmem:[%s541_s1 + $0x20] sm:$0xff] (!%p139_p2)  ;;  %v181_v7 = vld [vmem:[%s541_s1 + $0x28] sm:$0xff] (!%p139_p2) }
   0x7   : > { %v401_v5 = vpack.c.bf16 (!%p139_p2), %v179_v4, %v178_v2  ;;  %v405_v8 = vpack.c.bf16 (!%p139_p2), %v181_v7, %v180_v6  ;;  %v182_v9 = vld [vmem:[%s541_s1 + $0x30] sm:$0xff] (!%p139_p2)  ;;  %v183_v10 = vld [vmem:[%s541_s1 + $0x38] sm:$0xff] (!%p139_p2)  ;;  %v184_v13 = vld [vmem:[%s541_s1 + $0x40] sm:$0xff] (!%p139_p2) }
   0x8   : > { %398 = vmatprep.subr.bf16.mxu0 (!%p139_p2), %v397_v3  ;;  %v409_v12 = vpack.c.bf16 (!%p139_p2), %v183_v10, %v182_v9  ;;  %v185_v14 = vld [vmem:[%s541_s1 + $0x48] sm:$0xff] (!%p139_p2)  ;;  %v186_v16 = vld [vmem:[%s541_s1 + $0x50] sm:$0xff] (!%p139_p2)  ;;  %v187_v17 = vld [vmem:[%s541_s1 + $0x58] sm:$0xff] (!%p139_p2) }
   0x9   : > { %400 = vmatpush3.bf16.msra.mxu0 (!%p139_p2), %v397_v3  ;;  %v413_v15 = vpack.c.bf16 (!%p139_p2), %v185_v14, %v184_v13  ;;  %v417_v18 = vpack.c.bf16 (!%p139_p2), %v187_v17, %v186_v16  ;;  %v188_v19 = vld [vmem:[%s541_s1 + $0x60] sm:$0xff] (!%p139_p2)  ;;  %v189_v20 = vld [vmem:[%s541_s1 + $0x68] sm:$0xff] (!%p139_p2)  ;;  %v190_v22 = vld [vmem:[%s541_s1 + $0x70] sm:$0xff] (!%p139_p2) }
   0xa   : > { %402 = vmatprep.subr.bf16.mxu0 (!%p139_p2), %v401_v5  ;;  %v421_v21 = vpack.c.bf16 (!%p139_p2), %v189_v20, %v188_v19  ;;  %v191_v23 = vld [vmem:[%s541_s1 + $0x78] sm:$0xff] (!%p139_p2)  ;;  %v341_v26 = vld [vmem:[%s542_s2] ss:$0 sm:$0xff] (!%p139_p2) }
   0xb   : > { %v425_v24 = vpack.c.bf16 (!%p139_p2), %v191_v23, %v190_v22 }
   0xd   : > { %s545_s20 = smov (!%p163_p3, %s337_s20), 3  ;;  %404 = vmatpush3.bf16.msra.mxu0 %v401_v5 }
   0xe   : > { %s338_s27 = sshll.u32 %s545_s20, 3  ;;  %406 = vmatprep.subr.bf16.mxu0 %v405_v8 }
   0xf   : > { %s166_s7 = scalar_lea.vmem %s540_s0, %s338_s27  ;;  %s172_s4 = scalar_lea.vmem %s543_s3, %s338_s27 }
  0x10   : > { %v174_v11 = vld [vmem:[%s166_s7] sm:$0xff]  ;;  %v175_v25 = vld [vmem:[%s166_s7 + $0x8] sm:$0xff] }
  0x11   : > { %394 = vmatprep.mubr.f32.mxu0 %v174_v11  ;;  %408 = vmatpush3.bf16.msra.mxu0 %v405_v8 }
  0x12   : > { %410 = vmatprep.subr.bf16.mxu0 %v409_v12 }
  0x15   : > { %412 = vmatpush3.bf16.msra.mxu0 %v409_v12 }
  0x16   : > { %414 = vmatprep.subr.bf16.mxu0 %v413_v15 }
  0x19   : > { %416 = vmatpush3.bf16.msra.mxu0 %v413_v15 }
  0x1a   : > { %418 = vmatprep.subr.bf16.mxu0 %v417_v18 }
  0x1d   : > { %420 = vmatpush3.bf16.msra.mxu0 %v417_v18 }
  0x1e   : > { %422 = vmatprep.subr.bf16.mxu0 %v421_v21 }
  0x21   : > { %424 = vmatpush3.bf16.msra.mxu0 %v421_v21 }
  0x22   : > { %426 = vmatprep.subr.bf16.mxu0 %v425_v24 }
  0x25   : > { %428 = vmatpush3.bf16.msra.mxu0 %v425_v24 }
  0x28   : > { %395 = vmatmul.mubr.f32.vlgmr.msra.gmra.mrb[0].mxu0 %v175_v25 }
  0xfb   : > { %v396_v27 = vpop.f32.mrb[0].mxu0 }
  0xfc   : > { %v265_v28 = vpop.f32.mrb[1].mxu0  ;;  %v271_v30 = vadd.f32 %v396_v27, %v341_v26 }
  0xfd   : > { %v266_v29 = vadd.f32 %v341_v26, %v265_v28 }
  0xfe   : > { %275 = vst [vmem:[%s172_s4 + $0x8] sm:$0xff] %v271_v30 }
  0xff   : > { %274 = vst [vmem:[%s172_s4] sm:$0xff] %v266_v29 }
 0x100 PF: > { %s13_s12 = sadd.s32 1, %s443_s12  }
 0x101   : > { %p10_p4 = scmp.ge.s32.totalorder %s13_s12, 4  }
 0x103   :  { %12 = sbr.rel (!%p10_p4) target bundleno = 1 (0x1), region = 62 }

</bundles_post_ra>
